<compile_context>
chip_gen: v7x
topology: tpu7x:2x2x1
jax: 0.10.0
libtpu: 0.0.40
codegen_flags: <defaults>
</compile_context>

<pallas_src>
import jax
import jax.numpy as jnp
from jax import lax
from jax.experimental import pallas as pl
from jax.experimental.pallas import tpu as pltpu


def _bmm_kernel(x_ref, y_ref, o_ref):
    # x_ref: (bb, M, K), y_ref: (bb, K, N), o_ref: (bb, M, N).
    # One batched contraction over the whole block — batch dim 0, contract
    # x's K (axis 2) against y's K (axis 1). Accumulate in f32 on the MXU.
    out = lax.dot_general(
        x_ref[...],
        y_ref[...],
        dimension_numbers=(((2,), (1,)), ((0,), (0,))),
        preferred_element_type=jnp.float32,
    )
    o_ref[...] = out.astype(o_ref.dtype)


def batch_matmul(x, y, *, batch_block=None):
    B, M, K = x.shape
    B2, K2, N = y.shape
    assert B == B2 and K == K2, "shape mismatch for bmm"
    out_dtype = jnp.result_type(x.dtype, y.dtype)

    if batch_block is None:
        # At most 2 grid steps: lets the "parallel" axis shard across both
        # v7x TensorCores, while costing only 2x step overhead on 1-TC chips.
        batch_block = B if (B % 2 != 0 or B < 2) else B // 2
    assert B % batch_block == 0, "batch_block must divide B"
    grid = (B // batch_block,)

    itemsize = jnp.dtype(out_dtype).itemsize
    cost = pl.CostEstimate(
        flops=2 * B * M * K * N,
        transcendentals=0,
        bytes_accessed=(x.size * x.dtype.itemsize
                        + y.size * y.dtype.itemsize
                        + B * M * N * itemsize),
    )

    return pl.pallas_call(
        _bmm_kernel,
        out_shape=jax.ShapeDtypeStruct((B, M, N), out_dtype),
        grid_spec=pltpu.PrefetchScalarGridSpec(
            num_scalar_prefetch=0,
            grid=grid,
            in_specs=[
                pl.BlockSpec((batch_block, M, K), lambda b: (b, 0, 0)),
                pl.BlockSpec((batch_block, K, N), lambda b: (b, 0, 0)),
            ],
            out_specs=pl.BlockSpec((batch_block, M, N), lambda b: (b, 0, 0)),
        ),
        compiler_params=pltpu.CompilerParams(
            dimension_semantics=("parallel",),
        ),
        cost_estimate=cost,
    )(x, y)


if __name__ == "__main__":
    key = jax.random.PRNGKey(0)
    kx, ky = jax.random.split(key)
    # Shapes from BatchMatmulModule.input_shapes(): (10, 64, 32) @ (10, 32, 128)
    x = jax.random.normal(kx, (10, 64, 32), dtype=jnp.float32)
    y = jax.random.normal(ky, (10, 32, 128), dtype=jnp.float32)

    out = batch_matmul(x, y)
    out = jax.block_until_ready(out)

    # Correctness check against plain-JAX reference (same semantics as torch.bmm).
    ref = jnp.einsum("bmk,bkn->bmn", x, y)
    assert out.shape == (10, 64, 128), out.shape
    assert jnp.allclose(out, ref, atol=1e-4, rtol=1e-4), "mismatch vs reference"

    print("KERNEL_OK")
</pallas_src>

<mosaic_0001>
module attributes {stable_mosaic.version = 11 : i64} {
  func.func @_bmm_kernel(%arg0: i32, %arg1: memref<5x64x32xf32, #tpu.memory_space<vmem>>, %arg2: memref<5x32x128xf32, #tpu.memory_space<vmem>>, %arg3: memref<5x64x128xf32, #tpu.memory_space<vmem>>) attributes {dimension_semantics = [#tpu.dimension_semantics<parallel>], iteration_bounds = array<i64: 2>, scalar_prefetch = 0 : i64, scratch_operands = 0 : i64, tpu.core_type = #tpu.core_type<tc>, window_params = [{transform_indices = @transform_0, window_bounds = array<i64: 5, 64, 32>}, {transform_indices = @transform_1, window_bounds = array<i64: 5, 32, 128>}, {transform_indices = @transform_2, window_bounds = array<i64: 5, 64, 128>}]} {
    %c0 = arith.constant 0 : index
    %c0_0 = arith.constant 0 : index
    %c0_1 = arith.constant 0 : index
    %0 = vector.load %arg1[%c0, %c0_0, %c0_1] : memref<5x64x32xf32, #tpu.memory_space<vmem>>, vector<5x64x32xf32>
    %c0_2 = arith.constant 0 : index
    %c0_3 = arith.constant 0 : index
    %c0_4 = arith.constant 0 : index
    %1 = vector.load %arg2[%c0_2, %c0_3, %c0_4] : memref<5x32x128xf32, #tpu.memory_space<vmem>>, vector<5x32x128xf32>
    %cst = arith.constant dense<0.000000e+00> : vector<5x64x128xf32>
    %2 = tpu.matmul %0, %1, %cst {dimension_numbers = #tpu.dot_dimension_numbers<[2], [1], [1], [2], [0, 0, 0, 1, 1, 2], [0], [0]>} : vector<5x64x32xf32>, vector<5x32x128xf32>, vector<5x64x128xf32> -> vector<5x64x128xf32>
    %c0_5 = arith.constant 0 : index
    %c0_6 = arith.constant 0 : index
    %c0_7 = arith.constant 0 : index
    %3 = vector.load %arg3[%c0_5, %c0_6, %c0_7] : memref<5x64x128xf32, #tpu.memory_space<vmem>>, vector<5x64x128xf32>
    tpu.vector_store %arg3[%c0_5, %c0_6, %c0_7], %2 {strides = array<i32>} : memref<5x64x128xf32, #tpu.memory_space<vmem>>, vector<5x64x128xf32>,
    return
  }
  func.func @transform_0(%arg0: i32) -> (i32, i32, i32) {
    %c0_i32 = arith.constant 0 : i32
    %c0_i32_0 = arith.constant 0 : i32
    %c0_i32_1 = arith.constant 0 : i32
    return %arg0, %c0_i32, %c0_i32_0 : i32, i32, i32
  }
  func.func @transform_1(%arg0: i32) -> (i32, i32, i32) {
    %c0_i32 = arith.constant 0 : i32
    %c0_i32_0 = arith.constant 0 : i32
    %c0_i32_1 = arith.constant 0 : i32
    return %arg0, %c0_i32, %c0_i32_0 : i32, i32, i32
  }
  func.func @transform_2(%arg0: i32) -> (i32, i32, i32) {
    %c0_i32 = arith.constant 0 : i32
    %c0_i32_0 = arith.constant 0 : i32
    %c0_i32_1 = arith.constant 0 : i32
    return %arg0, %c0_i32, %c0_i32_0 : i32, i32, i32
  }
}

</mosaic_0001>

<bundles_post_ra>
// kernel: tpu_custom_call.1
= control target key start
LH: loop header
LB: loop body
LE: loop exit
PB: predicated region body
PF: predicated region fallthrough
CT: control target
= control target key end

     0   :  { %7 = vsyncpa [#allocation3], 0  ;;  %s1649_s0 = inlined_call_operand.vmem [shape: f32[10,64,32], index: 0, kind: input, shape index: {}]   ;;  %s1650_s1 = inlined_call_operand.vmem [shape: f32[10,32,128], index: 1, kind: input, shape index: {}]   ;;  %s1651_s2 = inlined_call_operand.hbm [shape: f32[10,64,128], index: 2, kind: output, shape index: {}]  }
   0x1   :  { %9 = vsyncpa [#allocation3 + $0x1], 0  ;;  %s1393_s9 = smov 0   ;;  %s1395_s10 = smov 0  }
   0x2   :  { %s1397_s11 = smov 0   ;;  %s1399_s12 = smov 0  }
   0x3 LB: > { %s1414_s13 = sadd.s32 4294967295, %s1373_s12   ;;  %s1008_s14 = sadd.s32 4294967294, %s1373_s12   ;;  %s1373_s12 = sphi %s1399_s12, %s1657_s12   ;;  %s1369_s11 = sphi %s1397_s11, %s1656_s11   ;;  %s1365_s10 = sphi %s1395_s10, %s1655_s10   ;;  %s1361_s9 = sphi %s1393_s9, %s1654_s9  }
   0x4   : > { %s1418_s15 = sadd.s32 1, %s1373_s12   ;;  %s74_s16 = sadd.s32 1, %s1369_s11 }
   0x5   : > { %s71_s17 = ssub.s32 %s1373_s12, %s1418_s15  ;;  %p84_p0 = scmp.ne.s32.totalorder %s1369_s11, %s1365_s10 }
   0x6   : > { %p72_p1 = scmp.eq.s32.totalorder %s71_s17, 0  ;;  %p85_p2 = scmp.eq.s32.totalorder %s1414_s13, 1 }
   0x7   : > { %p90_p3 = scmp.ne.s32.totalorder %s1365_s10, %s1361_s9  ;;  %p91_p4 = scmp.eq.s32.totalorder %s1008_s14, 1 }
   0x8   : > { %s1429_s18 = scalar_select %p72_p1, %s1369_s11, %s74_s16  }
   0x9   : > { %p1431_p5 = por %p85_p2, %p84_p0  ;;  %p1435_p6 = por %p91_p4, %p90_p3 }
   0xa   : > { %p1011_p7 = scmp.ge.s32.totalorder %s1373_s12, 1  ;;  %p129_p8 = scmp.lt.s32.totalorder %s1373_s12, 3 }
   0xc   : > { %p130_p9 = pnand %p1011_p7, %p129_p8 }
   0xd   : > { %s158_s21 = smul.u32 (!%p130_p9), 5, %s1414_s13  ;;  %vm233_vm0 = vcmask (!%p130_p9), 261120   ;;  %s155_s30 = sand.u32 (!%p130_p9), 1, %s1365_s10  }
   0xe   : > { %133 = sbr.rel (%p130_p9) target bundleno = 300 (0x12c), region = 28  ;;  %s1375_s17 = smov (!%p130_p9), [#allocation2]  }
   0xf   : > { %p159_p10 = scmp.lt.s32.totalorder (!%p130_p9), %s158_s21, 9  ;;  %s1269_s3 = smul.u32 (!%p130_p9), 320, %s155_s30 }
  0x10   : > { %s1064_s5 = smul.u32 (!%p130_p9), 5120, %s1414_s13  ;;  %s1608_s13 = scalar_lea.sflag (!%p130_p9), [#allocation3], %s155_s30 }
  0x11   : > { %s1555_s4 = scalar_lea.vmem (!%p130_p9), [#allocation2], %s1269_s3 }
  0x12   : > { %s934_s6 = sshll.u32 (!%p130_p9), %s1555_s4, 4  ;;  %s1598_s14 = scalar_lea.hbm (!%p130_p9), %s1651_s2, %s1064_s5  ;;  %s1600_s6 = int_to_ptr.vmem [resolvable:$true] %s934_s6 }
  0x13   : > { %s1311_s16 = scalar_lea.vmem (!%p130_p9), %s1600_s6, 5120 }
  0x14   : > { %p1312_p11 = scmp.ne.s32.totalorder (!%p130_p9), %s1600_s6, %s1311_s16 }
  0x15   : > { %s1659_s21 = smov (!%p159_p10, %s158_s21), 9 }
  0x16   : > { %s1060_s22 = sshll.u32 %s1659_s21, 6  ;;  %s1061_s23 = sshll.u32 %s1659_s21, 5 }
  0x17   : > { %s1445_s26 = scalar_lea.vmem %s1649_s0, %s1060_s22  ;;  %s1450_s29 = scalar_lea.vmem %s1650_s1, %s1061_s23 }
  0x18   : > { %v213_v0 = vld [vmem:[%s1450_s29] sm:$0xff]  ;;  %v214_v1 = vld [vmem:[%s1450_s29 + $0x8] sm:$0xff]  ;;  %v215_v2 = vld [vmem:[%s1450_s29 + $0x10] sm:$0xff]  ;;  %p1313_p12 = pnand %p1312_p11, %p1431_p5  ;;  %s1315_s21 = sshll.u32 %s1375_s17, 4  ;;  %s1316_s21 = int_to_ptr.vmem [resolvable:$false] %s1315_s21 }
  0x19   : > { %v1225_v3 = vpack.c.bf16 %v214_v1, %v213_v0  ;;  %v216_v4 = vld [vmem:[%s1450_s29 + $0x18] sm:$0xff]  ;;  %v173_v5 = vld [vmem:[%s1445_s26] sm:$0xff]  ;;  %v218_v9 = vld [vmem:[%s1450_s29 + $0x28] sm:$0xff]  ;;  %s1317_s22 = scalar_lea.vmem %s1316_s21, 10240  ;;  %p1318_p0 = scmp.lt.s32.totalorder %s1600_s6, %s1316_s21 }
  0x1a   : > { %v177_v6 = vld [vmem:[%s1445_s26 + $0x20] sm:$0xff]  ;;  %v1229_v7 = vpack.c.bf16 %v216_v4, %v215_v2  ;;  %1133 = vmatprep.mubr.msk.f32.mxu0 %vm233_vm0, %v173_v5  ;;  %v222_v11 = vld [vmem:[%s1450_s29 + $0x48] sm:$0xff]  ;;  %v219_v14 = vld [vmem:[%s1450_s29 + $0x30] sm:$0xff]  ;;  %p1314_p13 = pneg %p1313_p12  ;;  %p1319_p1 = scmp.lt.s32.totalorder %s1317_s22, %s1311_s16 }
  0x1b   : > { %1139 = vmatprep.mubr.msk.f32.mxu1 %vm233_vm0, %v177_v6  ;;  %v217_v8 = vld [vmem:[%s1450_s29 + $0x20] sm:$0xff]  ;;  %1226 = vmatprep.subr.bf16.mxu0 %v1225_v3  ;;  %v220_v15 = vld [vmem:[%s1450_s29 + $0x38] sm:$0xff]  ;;  %v223_v16 = vld [vmem:[%s1450_s29 + $0x50] sm:$0xff] }
  0x1c   : > { %1265 = vmatprep.subr.bf16.mxu1 %v1225_v3  ;;  %v221_v10 = vld [vmem:[%s1450_s29 + $0x40] sm:$0xff]  ;;  %1228 = vmatpush3.bf16.msra.mxu0 %v1225_v3  ;;  %v1233_v12 = vpack.c.bf16 %v218_v9, %v217_v8  ;;  %v224_v17 = vld [vmem:[%s1450_s29 + $0x58] sm:$0xff]  ;;  %v174_v18 = vld [vmem:[%s1445_s26 + $0x8] sm:$0xff]  ;;  %v1237_v22 = vpack.c.bf16 %v220_v15, %v219_v14  ;;  %p1320_p2 = por %p1319_p1, %p1318_p0 }
  0x1d   : > { %1267 = vmatpush3.bf16.msra.mxu1 %v1225_v3  ;;  %1230 = vmatprep.subr.bf16.mxu0 %v1229_v7  ;;  %v1241_v13 = vpack.c.bf16 %v222_v11, %v221_v10  ;;  %v178_v19 = vld [vmem:[%s1445_s26 + $0x28] sm:$0xff]  ;;  %v175_v20 = vld [vmem:[%s1445_s26 + $0x10] sm:$0xff]  ;;  %v1245_v23 = vpack.c.bf16 %v224_v17, %v223_v16  ;;  %v225_v24 = vld [vmem:[%s1450_s29 + $0x60] sm:$0xff] }
  0x1e   : > { %1266 = vmatprep.subr.bf16.mxu1 %v1229_v7  ;;  %v179_v21 = vld [vmem:[%s1445_s26 + $0x30] sm:$0xff]  ;;  %v226_v25 = vld [vmem:[%s1450_s29 + $0x68] sm:$0xff]  ;;  %v229_v26 = vld [vmem:[%s1450_s29 + $0x80] sm:$0xff]  ;;  %p1321_p3 = pnand %p1320_p2, %p1314_p13 }
  0x1f   : > { %v230_v27 = vld [vmem:[%s1450_s29 + $0x88] sm:$0xff]  ;;  %v176_v28 = vld [vmem:[%s1445_s26 + $0x18] sm:$0xff]  ;;  %v181_v30 = vld [vmem:[%s1445_s26 + $0x40] sm:$0xff]  ;;  %v1249_v32 = vpack.c.bf16 %v226_v25, %v225_v24 }
  0x20   : > { %1232 = vmatpush3.bf16.msra.mxu0 %v1229_v7  ;;  %v180_v29 = vld [vmem:[%s1445_s26 + $0x38] sm:$0xff]  ;;  %v189_v31 = vld [vmem:[%s1445_s26 + $0x80] sm:$0xff]  ;;  %v1257_v33 = vpack.c.bf16 %v230_v27, %v229_v26  ;;  %v227_v34 = vld [vmem:[%s1450_s29 + $0x70] sm:$0xff] }
  0x21   : > { %1268 = vmatpush3.bf16.msra.mxu1 %v1229_v7  ;;  %1242 = vmatprep.subr.bf16.mxu0 %v1241_v13  ;;  %v228_v35 = vld [vmem:[%s1450_s29 + $0x78] sm:$0xff]  ;;  %v231_v36 = vld [vmem:[%s1450_s29 + $0x90] sm:$0xff]  ;;  %v182_v38 = vld [vmem:[%s1445_s26 + $0x48] sm:$0xff] }
  0x22   : > { %1234 = vmatprep.subr.bf16.mxu1 %v1233_v12  ;;  %v232_v37 = vld [vmem:[%s1450_s29 + $0x98] sm:$0xff]  ;;  %v190_v39 = vld [vmem:[%s1445_s26 + $0x88] sm:$0xff]  ;;  %v183_v40 = vld [vmem:[%s1445_s26 + $0x50] sm:$0xff]  ;;  %v1253_v42 = vpack.c.bf16 %v228_v35, %v227_v34 }
  0x23   : > { %1134 = vmatmul.mubr.msk.f32.vlgmr.msra.gmra.mrb[0].mxu0 %vm233_vm0, %v174_v18  ;;  %v191_v41 = vld [vmem:[%s1445_s26 + $0x90] sm:$0xff]  ;;  %v1261_v43 = vpack.c.bf16 %v232_v37, %v231_v36  ;;  %v184_v44 = vld [vmem:[%s1445_s26 + $0x58] sm:$0xff]  ;;  %v185_v46 = vld [vmem:[%s1445_s26 + $0x60] sm:$0xff] }
  0x24   : > { %1140 = vmatmul.mubr.msk.f32.vlgmr.msra.gmra.mrb[0].mxu1 %vm233_vm0, %v178_v19  ;;  %1244 = vmatpush3.bf16.msra.mxu0 %v1241_v13  ;;  %v192_v45 = vld [vmem:[%s1445_s26 + $0x98] sm:$0xff]  ;;  %v193_v47 = vld [vmem:[%s1445_s26 + $0xa0] sm:$0xff]  ;;  %v186_v48 = vld [vmem:[%s1445_s26 + $0x68] sm:$0xff] }
  0x25   : > { %1236 = vmatpush3.bf16.msra.mxu1 %v1233_v12  ;;  %1136 = vmatprep.mubr.msk.f32.mxu0 %vm233_vm0, %v175_v20  ;;  %v194_v49 = vld [vmem:[%s1445_s26 + $0xa8] sm:$0xff]  ;;  %v187_v50 = vld [vmem:[%s1445_s26 + $0x70] sm:$0xff]  ;;  %v188_v52 = vld [vmem:[%s1445_s26 + $0x78] sm:$0xff] }
  0x26   : > { %1142 = vmatprep.mubr.msk.f32.mxu1 %vm233_vm0, %v179_v21  ;;  %1238 = vmatprep.subr.bf16.mxu1 %v1237_v22  ;;  %v195_v51 = vld [vmem:[%s1445_s26 + $0xb0] sm:$0xff]  ;;  %v196_v53 = vld [vmem:[%s1445_s26 + $0xb8] sm:$0xff]  ;;  %v197_v54 = vld [vmem:[%s1445_s26 + $0xc0] sm:$0xff] }
  0x27   : > { %1246 = vmatprep.subr.bf16.mxu0 %v1245_v23  ;;  %1137 = vmatmul.mubr.msk.f32.gmra.mrb[2].mxu0 %vm233_vm0, %v176_v28  ;;  %v205_v55 = vld [vmem:[%s1445_s26 + $0x100] sm:$0xff]  ;;  %v198_v56 = vld [vmem:[%s1445_s26 + $0xc8] sm:$0xff]  ;;  %v199_v58 = vld [vmem:[%s1445_s26 + $0xd0] sm:$0xff] }
  0x28   : > { %1143 = vmatmul.mubr.msk.f32.gmra.mrb[2].mxu1 %vm233_vm0, %v180_v29  ;;  %1248 = vmatpush3.bf16.msra.mxu0 %v1245_v23  ;;  %v206_v57 = vld [vmem:[%s1445_s26 + $0x108] sm:$0xff]  ;;  %v207_v59 = vld [vmem:[%s1445_s26 + $0x110] sm:$0xff]  ;;  %v200_v60 = vld [vmem:[%s1445_s26 + $0xd8] sm:$0xff] }
  0x29   : > { %1240 = vmatpush3.bf16.msra.mxu1 %v1237_v22  ;;  %1153 = vmatprep.mubr.msk.f32.mxu1 %vm233_vm0, %v181_v30  ;;  %v208_v61 = vld [vmem:[%s1445_s26 + $0x118] sm:$0xff]  ;;  %v201_v62 = vld [vmem:[%s1445_s26 + $0xe0] sm:$0xff]  ;;  %v202_v0 = vld [vmem:[%s1445_s26 + $0xe8] sm:$0xff] }
  0x2a   : > { %1173 = vmatprep.mubr.msk.f32.mxu0 %vm233_vm0, %v189_v31  ;;  %1250 = vmatprep.subr.bf16.mxu1 %v1249_v32  ;;  %v209_v63 = vld [vmem:[%s1445_s26 + $0x120] sm:$0xff]  ;;  %v210_v1 = vld [vmem:[%s1445_s26 + $0x128] sm:$0xff]  ;;  %v203_v2 = vld [vmem:[%s1445_s26 + $0xf0] sm:$0xff] }
  0x2b   : > { %1258 = vmatprep.subr.bf16.mxu0 %v1257_v33  ;;  %1174 = vmatmul.mubr.msk.f32.vlgmr.msra.gmra.mrb[4].mxu0 %vm233_vm0, %v190_v39  ;;  %v211_v3 = vld [vmem:[%s1445_s26 + $0x130] sm:$0xff]  ;;  %v204_v4 = vld [vmem:[%s1445_s26 + $0xf8] sm:$0xff] }
  0x2c   : > { %1154 = vmatmul.mubr.msk.f32.vlgmr.msra.gmra.mrb[4].mxu1 %vm233_vm0, %v182_v38  ;;  %1260 = vmatpush3.bf16.msra.mxu0 %v1257_v33  ;;  %v212_v5 = vld [vmem:[%s1445_s26 + $0x138] sm:$0xff] }
  0x2d   : > { %1252 = vmatpush3.bf16.msra.mxu1 %v1249_v32  ;;  %1156 = vmatprep.mubr.msk.f32.mxu1 %vm233_vm0, %v183_v40 }
  0x2e   : > { %1176 = vmatprep.mubr.msk.f32.mxu0 %vm233_vm0, %v191_v41  ;;  %1254 = vmatprep.subr.bf16.mxu1 %v1253_v42 }
  0x2f   : > { %1262 = vmatprep.subr.bf16.mxu0 %v1261_v43  ;;  %1177 = vmatmul.mubr.msk.f32.gmra.mrb[6].mxu0 %vm233_vm0, %v192_v45 }
  0x30   : > { %1157 = vmatmul.mubr.msk.f32.gmra.mrb[6].mxu1 %vm233_vm0, %v184_v44  ;;  %1179 = vmatprep.mubr.msk.f32.mxu0 %vm233_vm0, %v193_v47 }
  0x31   : > { %1159 = vmatprep.mubr.msk.f32.mxu1 %vm233_vm0, %v185_v46  ;;  %1256 = vmatpush3.bf16.msra.mxu1 %v1253_v42 }
  0x32   : > { %1264 = vmatpush3.bf16.msra.mxu0 %v1261_v43 }
  0x33   : > { %1180 = vmatmul.mubr.msk.f32.gmra.mrb[8].mxu0 %vm233_vm0, %v194_v49 }
  0x34   : > { %1160 = vmatmul.mubr.msk.f32.gmra.mrb[8].mxu1 %vm233_vm0, %v186_v48  ;;  %1182 = vmatprep.mubr.msk.f32.mxu0 %vm233_vm0, %v195_v51 }
  0x35   : > { %1162 = vmatprep.mubr.msk.f32.mxu1 %vm233_vm0, %v187_v50 }
  0x37   : > { %1183 = vmatmul.mubr.msk.f32.gmra.mrb[10].mxu0 %vm233_vm0, %v196_v53 }
  0x38   : > { %1163 = vmatmul.mubr.msk.f32.gmra.mrb[10].mxu1 %vm233_vm0, %v188_v52  ;;  %1213 = vmatprep.mubr.msk.f32.mxu0 %vm233_vm0, %v205_v55 }
  0x39   : > { %1193 = vmatprep.mubr.msk.f32.mxu1 %vm233_vm0, %v197_v54 }
  0x3b   : > { %1214 = vmatmul.mubr.msk.f32.vlgmr.msra.gmra.mrb[12].mxu0 %vm233_vm0, %v206_v57 }
  0x3c   : > { %1194 = vmatmul.mubr.msk.f32.vlgmr.msra.gmra.mrb[12].mxu1 %vm233_vm0, %v198_v56  ;;  %1216 = vmatprep.mubr.msk.f32.mxu0 %vm233_vm0, %v207_v59 }
  0x3d   : > { %1196 = vmatprep.mubr.msk.f32.mxu1 %vm233_vm0, %v199_v58 }
  0x3f   : > { %1217 = vmatmul.mubr.msk.f32.gmra.mrb[14].mxu0 %vm233_vm0, %v208_v61 }
  0x40   : > { %1197 = vmatmul.mubr.msk.f32.gmra.mrb[14].mxu1 %vm233_vm0, %v200_v60  ;;  %1219 = vmatprep.mubr.msk.f32.mxu0 %vm233_vm0, %v209_v63 }
  0x41   : > { %1199 = vmatprep.mubr.msk.f32.mxu1 %vm233_vm0, %v201_v62 }
  0x43   : > { %1220 = vmatmul.mubr.msk.f32.gmra.mrb[16].mxu0 %vm233_vm0, %v210_v1 }
  0x44   : > { %1200 = vmatmul.mubr.msk.f32.gmra.mrb[16].mxu1 %vm233_vm0, %v202_v0  ;;  %1222 = vmatprep.mubr.msk.f32.mxu0 %vm233_vm0, %v211_v3 }
  0x45   : > { %1202 = vmatprep.mubr.msk.f32.mxu1 %vm233_vm0, %v203_v2 }
  0x47   : > { %1223 = vmatmul.mubr.msk.f32.gmra.mrb[18].mxu0 %vm233_vm0, %v212_v5 }
  0x48   : > { %1203 = vmatmul.mubr.msk.f32.gmra.mrb[18].mxu1 %vm233_vm0, %v204_v4 }
  0xf6   : > { %v1135_v6 = vpop.f32.mrb[0].mxu0 }
  0xf7   : > { %v1141_v7 = vpop.f32.mrb[0].mxu1  ;;  %880 = vst [vmem:[%s1555_s4 + $0x8] sm:$0xff] %v1135_v6  ;;  %v324_v8 = vpop.f32.mrb[1].mxu0 }
  0xf8   : > { %884 = vst [vmem:[%s1555_s4 + $0x28] sm:$0xff] %v1141_v7  ;;  %v344_v9 = vpop.f32.mrb[1].mxu1  ;;  %879 = vst [vmem:[%s1555_s4] sm:$0xff] %v324_v8 }
  0xf9   : > { %883 = vst [vmem:[%s1555_s4 + $0x20] sm:$0xff] %v344_v9 }
  0xfa   : > { %v1138_v10 = vpop.f32.mrb[2].mxu0 }
  0xfb   : > { %v1144_v11 = vpop.f32.mrb[2].mxu1  ;;  %882 = vst [vmem:[%s1555_s4 + $0x18] sm:$0xff] %v1138_v10  ;;  %v334_v12 = vpop.f32.mrb[3].mxu0 }
  0xfc   : > { %886 = vst [vmem:[%s1555_s4 + $0x38] sm:$0xff] %v1144_v11  ;;  %v354_v13 = vpop.f32.mrb[3].mxu1  ;;  %881 = vst [vmem:[%s1555_s4 + $0x10] sm:$0xff] %v334_v12 }
  0xfd   : > { %885 = vst [vmem:[%s1555_s4 + $0x30] sm:$0xff] %v354_v13 }
  0xfe   : > { %v1175_v15 = vpop.f32.mrb[4].mxu0 }
  0xff   : > { %v1155_v14 = vpop.f32.mrb[4].mxu1  ;;  %896 = vst [vmem:[%s1555_s4 + $0x88] sm:$0xff] %v1175_v15  ;;  %v582_v17 = vpop.f32.mrb[5].mxu0 }
 0x100   : > { %888 = vst [vmem:[%s1555_s4 + $0x48] sm:$0xff] %v1155_v14  ;;  %v453_v16 = vpop.f32.mrb[5].mxu1  ;;  %895 = vst [vmem:[%s1555_s4 + $0x80] sm:$0xff] %v582_v17 }
 0x101   : > { %887 = vst [vmem:[%s1555_s4 + $0x40] sm:$0xff] %v453_v16 }
 0x102   : > { %v1178_v19 = vpop.f32.mrb[6].mxu0 }
 0x103   : > { %v1158_v18 = vpop.f32.mrb[6].mxu1  ;;  %898 = vst [vmem:[%s1555_s4 + $0x98] sm:$0xff] %v1178_v19  ;;  %v592_v21 = vpop.f32.mrb[7].mxu0 }
 0x104   : > { %890 = vst [vmem:[%s1555_s4 + $0x58] sm:$0xff] %v1158_v18  ;;  %v463_v20 = vpop.f32.mrb[7].mxu1  ;;  %897 = vst [vmem:[%s1555_s4 + $0x90] sm:$0xff] %v592_v21 }
 0x105   : > { %889 = vst [vmem:[%s1555_s4 + $0x50] sm:$0xff] %v463_v20 }
 0x106   : > { %v1181_v23 = vpop.f32.mrb[8].mxu0 }
 0x107   : > { %v1161_v22 = vpop.f32.mrb[8].mxu1  ;;  %900 = vst [vmem:[%s1555_s4 + $0xa8] sm:$0xff] %v1181_v23  ;;  %v602_v25 = vpop.f32.mrb[9].mxu0 }
 0x108   : > { %892 = vst [vmem:[%s1555_s4 + $0x68] sm:$0xff] %v1161_v22  ;;  %v473_v24 = vpop.f32.mrb[9].mxu1  ;;  %899 = vst [vmem:[%s1555_s4 + $0xa0] sm:$0xff] %v602_v25 }
 0x109   : > { %891 = vst [vmem:[%s1555_s4 + $0x60] sm:$0xff] %v473_v24 }
 0x10a   : > { %v1184_v27 = vpop.f32.mrb[10].mxu0 }
 0x10b   : > { %v1164_v26 = vpop.f32.mrb[10].mxu1  ;;  %902 = vst [vmem:[%s1555_s4 + $0xb8] sm:$0xff] %v1184_v27  ;;  %v612_v29 = vpop.f32.mrb[11].mxu0 }
 0x10c   : > { %894 = vst [vmem:[%s1555_s4 + $0x78] sm:$0xff] %v1164_v26  ;;  %v483_v28 = vpop.f32.mrb[11].mxu1  ;;  %901 = vst [vmem:[%s1555_s4 + $0xb0] sm:$0xff] %v612_v29 }
 0x10d   : > { %893 = vst [vmem:[%s1555_s4 + $0x70] sm:$0xff] %v483_v28 }
 0x10e   : > { %v1215_v31 = vpop.f32.mrb[12].mxu0 }
 0x10f   : > { %v1195_v30 = vpop.f32.mrb[12].mxu1  ;;  %912 = vst [vmem:[%s1555_s4 + $0x108] sm:$0xff] %v1215_v31  ;;  %v840_v33 = vpop.f32.mrb[13].mxu0 }
 0x110   : > { %904 = vst [vmem:[%s1555_s4 + $0xc8] sm:$0xff] %v1195_v30  ;;  %v711_v32 = vpop.f32.mrb[13].mxu1  ;;  %911 = vst [vmem:[%s1555_s4 + $0x100] sm:$0xff] %v840_v33 }
 0x111   : > { %903 = vst [vmem:[%s1555_s4 + $0xc0] sm:$0xff] %v711_v32 }
 0x112   : > { %v1218_v35 = vpop.f32.mrb[14].mxu0 }
 0x113   : > { %v1198_v34 = vpop.f32.mrb[14].mxu1  ;;  %914 = vst [vmem:[%s1555_s4 + $0x118] sm:$0xff] %v1218_v35  ;;  %v850_v37 = vpop.f32.mrb[15].mxu0 }
 0x114   : > { %906 = vst [vmem:[%s1555_s4 + $0xd8] sm:$0xff] %v1198_v34  ;;  %v721_v36 = vpop.f32.mrb[15].mxu1  ;;  %913 = vst [vmem:[%s1555_s4 + $0x110] sm:$0xff] %v850_v37 }
 0x115   : > { %905 = vst [vmem:[%s1555_s4 + $0xd0] sm:$0xff] %v721_v36 }
 0x116   : > { %v1221_v39 = vpop.f32.mrb[16].mxu0 }
 0x117   : > { %v1201_v38 = vpop.f32.mrb[16].mxu1  ;;  %916 = vst [vmem:[%s1555_s4 + $0x128] sm:$0xff] %v1221_v39  ;;  %v860_v41 = vpop.f32.mrb[17].mxu0 }
 0x118   : > { %908 = vst [vmem:[%s1555_s4 + $0xe8] sm:$0xff] %v1201_v38  ;;  %v731_v40 = vpop.f32.mrb[17].mxu1  ;;  %915 = vst [vmem:[%s1555_s4 + $0x120] sm:$0xff] %v860_v41 }
 0x119   : > { %907 = vst [vmem:[%s1555_s4 + $0xe0] sm:$0xff] %v731_v40 }
 0x11a   : > { %v1224_v43 = vpop.f32.mrb[18].mxu0 }
 0x11b   : > { %v1204_v42 = vpop.f32.mrb[18].mxu1  ;;  %918 = vst [vmem:[%s1555_s4 + $0x138] sm:$0xff] %v1224_v43  ;;  %v870_v45 = vpop.f32.mrb[19].mxu0 }
 0x11c   : > { %910 = vst [vmem:[%s1555_s4 + $0xf8] sm:$0xff] %v1204_v42  ;;  %v741_v44 = vpop.f32.mrb[19].mxu1  ;;  %917 = vst [vmem:[%s1555_s4 + $0x130] sm:$0xff] %v870_v45 }
 0x11d   : > { %909 = vst [vmem:[%s1555_s4 + $0xf0] sm:$0xff] %v741_v44 }
 0x11e   : > { %1324 = shalt.err (!%p1321_p3)
}
 0x11f   : > { %s1325_s23 = scalar_lea.hbm %s1598_s14, 5120  ;;  %s1329_s26 = scalar_lea.hbm %s1651_s2, 10240 }
 0x120   : > { %p1326_p4 = scmp.ne.s32.totalorder %s1598_s14, %s1325_s23  ;;  %p1330_p9 = scmp.lt.u32.totalorder %s1598_s14, %s1651_s2 }
 0x121   : > { %p1331_p10 = scmp.lt.u32.totalorder %s1329_s26, %s1325_s23  ;;  %p1333_p12 = scmp.lt.u32.totalorder %s1325_s23, %s1598_s14 }
 0x122   : > { %p1327_p7 = pnand %p1326_p4, %p1431_p5 }
 0x123   : > { %p1332_p11 = por %p1331_p10, %p1330_p9 }
 0x124   : > { %p1328_p8 = pneg %p1327_p7 }
 0x125   : > { %p1334_p13 = por %p1333_p12, %p1332_p11 }
 0x127   : > { %p1335_p0 = pnand %p1334_p13, %p1328_p8 }
 0x129   : > { %1338 = shalt.err (!%p1335_p0)
}
 0x12a   : > { %s1376_s29 = smov 128   ;;  %s1377_s30 = smov 8  }
 0x12b   : > { %1270 = dma.vmem_to_hbm [thread:$0]  (%p1431_p5), %s1600_s6, 5120, %s1598_s14, %s1608_s13, %s1376_s29, %s1376_s29, %s1377_s30  }
 0x12c PF: > { %p1276_p1 = scmp.ge.s32.totalorder %s1373_s12, 2  ;;  %s949_s3 = sand.u32 1, %s1361_s9  }
 0x12d   : > { %s950_s4 = scalar_lea.sflag [#allocation3], %s949_s3 }
 0x12e   : > { %p1273_p2 = pnand %p1276_p1, %p1435_p6 }
 0x130   : > { %1356 = dma.done.wait (!%p1273_p2), %s950_s4, 5120  }
 0x131   : > { %1358 = vsyncadd (!%p1273_p2), %s950_s4, 4294962176  ;;  %p12_p3 = scmp.ge.s32.totalorder %s1418_s15, 4   ;;  %s1654_s9 = smov %s1365_s10 }
 0x132   : > { %s1655_s10 = smov %s1369_s11  ;;  %s1656_s11 = smov %s1429_s18 }
 0x133   : > { %s1657_s12 = smov %s1418_s15  ;;  %14 = sbr.rel (!%p12_p3) target bundleno = 3 (0x3), region = 66 }
 0x13a   :  { %955 = vsyncpa [#allocation3], 1 }
 0x13b   :  { %957 = vsyncpa [#allocation3 + $0x1], 1 }

</bundles_post_ra>
